<compile_context>
chip_gen: v7x
topology: tpu7x:2x2x1
jax: 0.10.0
libtpu: 0.0.40
codegen_flags: <defaults>
</compile_context>

<pallas_src>
import functools

import jax
import jax.numpy as jnp
from jax import lax
from jax.experimental import pallas as pl
from jax.experimental.pallas import tpu as pltpu


def _pyramid_oc_kernel(x_q_ref, x_k_ref, wqu_ref, bqu_ref, wkv_ref, bkv_ref,
                       wfu_ref, wfold_ref, bout_ref, out_ref,
                       q_sc, u_sc, m_sc, acc_sc, *, ck, cv):
    ki = pl.program_id(2)

    # ---- per-query-tile init: fused [key/query | up_dr] projection + online-softmax state
    @pl.when(ki == 0)
    def _init():
        xq = x_q_ref[...].astype(jnp.bfloat16)                       # (Cin, tq)
        pq = jnp.dot(wqu_ref[...], xq,
                     preferred_element_type=jnp.float32) + bqu_ref[...]
        pq = jnp.maximum(pq, 0.0)            # BN+ReLU folded for both key/query and up_dr
        q_sc[...] = pq[:ck, :].astype(jnp.bfloat16)                  # shared q == k proj
        u_sc[...] = pq[ck:, :].astype(jnp.bfloat16)                  # up_dr activations
        m_sc[...] = jnp.full(m_sc.shape, -jnp.inf, dtype=jnp.float32)
        acc_sc[...] = jnp.zeros(acc_sc.shape, dtype=jnp.float32)

    # ---- key-side fused projection for this key tile: [key | value | ones-row | 0-pad]
    xk = x_k_ref[...].astype(jnp.bfloat16)                           # (Cin, tk)
    pk = jnp.dot(wkv_ref[...], xk,
                 preferred_element_type=jnp.float32) + bkv_ref[...]  # (ck+cv+pad, tk)
    k = jnp.maximum(pk[:ck, :], 0.0).astype(jnp.bfloat16)            # (ck, tk)
    v_ext = pk[ck:, :].astype(jnp.bfloat16)                          # (cv+pad, tk); row cv == 1

    # ---- score tile: s[a, b] = <k_a, q_b>  (axis 0 = key/softmax axis; Q == K symmetry)
    s = lax.dot_general(k, q_sc[...], (((0,), (0,)), ((), ())),
                        preferred_element_type=jnp.float32)          # (tk, tq)

    # ---- online softmax update; exp(s - m) and bf16 cast fused -> single bf16 buffer
    m_prev = m_sc[...]                                               # (1, tq)
    m_new = jnp.maximum(m_prev, jnp.max(s, axis=0, keepdims=True))
    alpha = jnp.exp(m_prev - m_new)
    p = jnp.exp(s - m_new).astype(jnp.bfloat16)                      # (tk, tq)
    # ctx AND the row-sum l in one MXU pass (ones-row folded into the value projection),
    # so normalization is consistent with the bf16 operand the MXU actually consumed.
    acc_sc[...] = alpha * acc_sc[...] + jnp.dot(
        v_ext, p, preferred_element_type=jnp.float32)                # (cv+pad, tq)
    m_sc[...] = m_new

    # ---- finalize: normalize, prior / up_dr output projections, ReLU, lane-dense store
    @pl.when(ki == pl.num_programs(2) - 1)
    def _finalize():
        acc = acc_sc[...]
        l = acc[cv:cv + 1, :]                                        # unnormalized row sums
        ctx = (acc[:cv, :] * pl.reciprocal(l, approx=True)).astype(jnp.bfloat16)
        prior = jnp.dot(wfold_ref[...], ctx,
                        preferred_element_type=jnp.float32)          # (Cout, tq)
        updr = jnp.dot(wfu_ref[...], u_sc[...],
                       preferred_element_type=jnp.float32)           # (Cout, tq)
        out = jnp.maximum(prior + updr + bout_ref[...], 0.0)
        out_ref[...] = out.astype(out_ref.dtype)


def pyramid_oc_forward(x_nchw, kp, *, tq=None, tk=None, out_dtype=jnp.bfloat16):
    """kp = dict from fold_params(). Returns (B, Cout, H, W) in out_dtype."""
    B, Cin, H, W = x_nchw.shape
    HW = H * W
    ck, cv, npad = kp["ck"], kp["cv"], kp["npad"]
    Cout = kp["wfu"].shape[0]
    tq = tq or min(HW, 512)
    tk = tk or min(HW, 512)
    assert HW % tq == 0 and HW % tk == 0 and tq % 128 == 0 and tk % 128 == 0
    assert Cin % 8 == 0 and Cout % 8 == 0 and ck % 8 == 0 and cv % 8 == 0

    # Channels-first, spatially flattened: a pure reshape of NCHW, f32 straight into
    # the kernel (no standalone XLA cast / extra HBM round trip).
    x = x_nchw.reshape(B, Cin, HW)

    kernel = functools.partial(_pyramid_oc_kernel, ck=ck, cv=cv)

    out = pl.pallas_call(
        kernel,
        out_shape=jax.ShapeDtypeStruct((B, Cout, HW), out_dtype),
        grid_spec=pltpu.PrefetchScalarGridSpec(
            num_scalar_prefetch=0,
            grid=(B, HW // tq, HW // tk),
            in_specs=[
                pl.BlockSpec((pl.Squeezed(), Cin, tq), lambda b, qi, ki: (b, 0, qi)),  # x (q cols)
                pl.BlockSpec((pl.Squeezed(), Cin, tk), lambda b, qi, ki: (b, 0, ki)),  # x (k cols)
                pl.BlockSpec((ck + Cin, Cin), lambda b, qi, ki: (0, 0)),        # [key | up_dr] W
                pl.BlockSpec((ck + Cin, 1), lambda b, qi, ki: (0, 0)),          # [key | up_dr] b
                pl.BlockSpec((ck + cv + npad, Cin), lambda b, qi, ki: (0, 0)),  # [key | value | 1s] W
                pl.BlockSpec((ck + cv + npad, 1), lambda b, qi, ki: (0, 0)),    # [key | value | 1s] b
                pl.BlockSpec((Cout, Cin), lambda b, qi, ki: (0, 0)),            # conv_f (up_dr half)
                pl.BlockSpec((Cout, cv), lambda b, qi, ki: (0, 0)),             # folded W-conv * conv_f
                pl.BlockSpec((Cout, 1), lambda b, qi, ki: (0, 0)),              # folded output bias
            ],
            out_specs=pl.BlockSpec((pl.Squeezed(), Cout, tq),
                                   lambda b, qi, ki: (b, 0, qi)),
            scratch_shapes=[
                pltpu.VMEM((ck, tq), jnp.bfloat16),        # q (== k) projection of this q tile
                pltpu.VMEM((Cin, tq), jnp.bfloat16),       # up_dr activations of this q tile
                pltpu.VMEM((1, tq), jnp.float32),          # running max m
                pltpu.VMEM((cv + npad, tq), jnp.float32),  # ctx accumulator; row cv == row-sum l
            ],
        ),
        compiler_params=pltpu.CompilerParams(
            # batch and query-tile axes parallel (v7x megacore even at B == 1),
            # key-tile axis carries the online-softmax reduction.
            dimension_semantics=("parallel", "parallel", "arbitrary")),
    )(x, x, kp["wqu"], kp["bqu"], kp["wkv"], kp["bkv"],
      kp["wfu"], kp["wfold"], kp["bout"])

    return out.reshape(B, Cout, H, W)


# ----------------------------- parameter plumbing -----------------------------

def _fold_bn(w, b, gamma, beta, mean, var, eps=1e-5):
    """Fold eval-mode BatchNorm into the preceding 1x1 conv. w: (O, I), b: (O,)."""
    s = gamma / jnp.sqrt(var + eps)
    return w * s[:, None], (b - mean) * s + beta


def make_raw_params(key, in_channels, out_channels):
    """Random eval-mode parameters of PyramidOCModule(sizes=[1])."""
    Cin, Cout = in_channels, out_channels
    Ck, Cv = out_channels, in_channels // 2
    ks = iter(jax.random.split(key, 24))
    f32 = jnp.float32

    def nrm(shape, s=0.1):
        return s * jax.random.normal(next(ks), shape, f32)

    def bn_params(c):
        return dict(gamma=1.0 + nrm((c,)), beta=nrm((c,)), mean=nrm((c,)),
                    var=0.5 + jnp.abs(jax.random.normal(next(ks), (c,), f32)))

    return {
        # _PyramidSelfAttentionBlock(in_channels, key=Cout, value=Cin//2, out=Cin, scale=1)
        "wk": nrm((Ck, Cin)), "bk": nrm((Ck,)), "bn_k": bn_params(Ck),
        "wv": nrm((Cv, Cin)), "bv": nrm((Cv,)),
        # PyTorch zero-inits W; use non-zero weights so the attention path is exercised.
        "ww": nrm((Cin, Cv)), "bw": nrm((Cin,)),
        # up_dr: Conv(Cin -> Cin*group) + BN + ReLU
        "wu": nrm((Cin, Cin)), "bu": nrm((Cin,)), "bn_u": bn_params(Cin),
        # conv_bn_dropout: Conv(2*Cin*group -> Cout) + BN + ReLU (+ Dropout2d = identity)
        "wf": nrm((Cout, 2 * Cin)), "bf": nrm((Cout,)), "bn_f": bn_params(Cout),
    }


def fold_params(p, in_channels, out_channels, npad=16):
    """One-time host-side constant folding of the module into kernel parameters."""
    Cin = in_channels
    Ck, Cv = p["wk"].shape[0], p["wv"].shape[0]

    # Eval-mode BatchNorm folds.
    wk, bk = _fold_bn(p["wk"], p["bk"], **p["bn_k"])
    wu, bu = _fold_bn(p["wu"], p["bu"], **p["bn_u"])
    wf, bf = _fold_bn(p["wf"], p["bf"], **p["bn_f"])

    # key_scale = Ck**-0.5 folded as sqrt(key_scale) into the shared key/query projection
    # (ReLU commutes with a positive scale; Q == K gives the full factor in QK^T).
    r = float(Ck) ** -0.25
    wk, bk = wk * r, bk * r

    # conv_bn_dropout splits over the channel concat order [up_dr | prior].
    wf_u, wf_p = wf[:, :Cin], wf[:, Cin:]

    # Fold the prior chain  W conv -> conv_f(prior half)  into one weight + bias.
    w_fold = wf_p @ p["ww"]                  # (Cout, Cv)
    b_out = wf_p @ p["bw"] + bf              # (Cout,)

    # q-side fused projection [key/query | up_dr].
    wqu = jnp.concatenate([wk, wu], axis=0)                    # (Ck+Cin, Cin)
    bqu = jnp.concatenate([bk, bu], axis=0)                    # (Ck+Cin,)

    # k-side fused projection [key | value | ones-row | zero pad]; the ones-row
    # (zero weights, bias 1) makes the ctx MXU matmul also emit the softmax row sums.
    wkv = jnp.concatenate([wk, p["wv"], jnp.zeros((npad, Cin), jnp.float32)], axis=0)
    ones_bias = jnp.zeros((npad,), jnp.float32).at[0].set(1.0)
    bkv = jnp.concatenate([bk, p["bv"], ones_bias], axis=0)    # (Ck+Cv+npad,)

    return dict(
        wqu=wqu.astype(jnp.bfloat16), bqu=bqu.reshape(-1, 1).astype(jnp.float32),
        wkv=wkv.astype(jnp.bfloat16), bkv=bkv.reshape(-1, 1).astype(jnp.float32),
        wfu=wf_u.astype(jnp.bfloat16), wfold=w_fold.astype(jnp.bfloat16),
        bout=b_out.reshape(-1, 1).astype(jnp.float32),
        ck=Ck, cv=Cv, npad=npad)


def _reference(x, p):
    """Pure-JAX f32 re-implementation of PyramidOCModule.forward (eval, sizes=[1])."""
    B, Cin, H, W = x.shape
    HW = H * W
    Ck, Cv = p["wk"].shape[0], p["wv"].shape[0]

    def conv1x1(t, w, b):
        return jnp.einsum('oc,bchw->bohw', w, t) + b[None, :, None, None]

    def bn(t, gamma, beta, mean, var, eps=1e-5):
        inv = gamma / jnp.sqrt(var + eps)
        return (t - mean[None, :, None, None]) * inv[None, :, None, None] \
            + beta[None, :, None, None]

    # _PyramidSelfAttentionBlock, scale = 1
    key = jax.nn.relu(bn(conv1x1(x, p["wk"], p["bk"]), **p["bn_k"]))
    query = key
    value = conv1x1(x, p["wv"], p["bv"])
    q = query.reshape(B, Ck, HW).transpose(0, 2, 1)
    k = key.reshape(B, Ck, HW)
    v = value.reshape(B, Cv, HW).transpose(0, 2, 1)
    sim = jnp.einsum('bqc,bck->bqk', q, k) * (float(Ck) ** -0.5)
    sim = jax.nn.softmax(sim, axis=-1)
    ctx = jnp.einsum('bqk,bkc->bqc', sim, v).transpose(0, 2, 1).reshape(B, Cv, H, W)
    prior = conv1x1(ctx, p["ww"], p["bw"])                 # W conv

    # PyramidOCModule
    updr = jax.nn.relu(bn(conv1x1(x, p["wu"], p["bu"]), **p["bn_u"]))
    cat = jnp.concatenate([updr, prior], axis=1)
    out = jax.nn.relu(bn(conv1x1(cat, p["wf"], p["bf"]), **p["bn_f"]))
    return out                                             # Dropout2d identity in eval


if __name__ == "__main__":
    B, Cin, H, W = 2, 32, 16, 16
    Cout = 32                                 # module out_channels (== block key_channels)

    root = jax.random.PRNGKey(0)
    key_x, key_p = jax.random.split(root)
    x = jax.random.normal(key_x, (B, Cin, H, W), jnp.float32)
    raw = make_raw_params(key_p, Cin, Cout)
    folded = fold_params(raw, Cin, Cout)

    # tq=tk=128 at HW=256 -> 2x2 spatial tiles per batch element: exercises the
    # online-softmax accumulation across key tiles and the parallel query-tile axis.
    y = pyramid_oc_forward(x, folded, tq=128, tk=128)
    y = jax.block_until_ready(y)

    y_ref = _reference(x, raw)
    assert y.shape == (B, Cout, H, W)
    y32 = jnp.asarray(y, jnp.float32)
    err = float(jnp.max(jnp.abs(y32 - y_ref)))
    # bf16 MXU operands + bf16 output + approx reciprocal vs. the pure-f32 reference.
    assert jnp.allclose(y32, y_ref, atol=4e-2, rtol=4e-2), f"max abs err {err}"

    print("KERNEL_OK")
</pallas_src>

<mosaic_0001>
module attributes {stable_mosaic.version = 11 : i64} {
  func.func @_pyramid_oc_kernel(%arg0: i32, %arg1: i32, %arg2: i32, %arg3: memref<1x32x128xf32, #tpu.memory_space<vmem>>, %arg4: memref<1x32x128xf32, #tpu.memory_space<vmem>>, %arg5: memref<64x32xbf16, #tpu.memory_space<vmem>>, %arg6: memref<64x1xf32, #tpu.memory_space<vmem>>, %arg7: memref<64x32xbf16, #tpu.memory_space<vmem>>, %arg8: memref<64x1xf32, #tpu.memory_space<vmem>>, %arg9: memref<32x32xbf16, #tpu.memory_space<vmem>>, %arg10: memref<32x16xbf16, #tpu.memory_space<vmem>>, %arg11: memref<32x1xf32, #tpu.memory_space<vmem>>, %arg12: memref<1x32x128xbf16, #tpu.memory_space<vmem>>, %arg13: memref<32x128xbf16, #tpu.memory_space<vmem>>, %arg14: memref<32x128xbf16, #tpu.memory_space<vmem>>, %arg15: memref<1x128xf32, #tpu.memory_space<vmem>>, %arg16: memref<32x128xf32, #tpu.memory_space<vmem>>) attributes {dimension_semantics = [#tpu.dimension_semantics<parallel>, #tpu.dimension_semantics<parallel>, #tpu.dimension_semantics<arbitrary>], iteration_bounds = array<i64: 2, 2, 2>, scalar_prefetch = 0 : i64, scratch_operands = 4 : i64, tpu.core_type = #tpu.core_type<tc>, window_params = [{transform_indices = @transform_0, window_bounds = array<i64: 1, 32, 128>}, {transform_indices = @transform_1, window_bounds = array<i64: 1, 32, 128>}, {pipeline_mode = #tpu.pipeline_mode<synchronous>, transform_indices = @transform_2, window_bounds = array<i64: 64, 32>}, {pipeline_mode = #tpu.pipeline_mode<synchronous>, transform_indices = @transform_3, window_bounds = array<i64: 64, 1>}, {pipeline_mode = #tpu.pipeline_mode<synchronous>, transform_indices = @transform_4, window_bounds = array<i64: 64, 32>}, {pipeline_mode = #tpu.pipeline_mode<synchronous>, transform_indices = @transform_5, window_bounds = array<i64: 64, 1>}, {pipeline_mode = #tpu.pipeline_mode<synchronous>, transform_indices = @transform_6, window_bounds = array<i64: 32, 32>}, {pipeline_mode = #tpu.pipeline_mode<synchronous>, transform_indices = @transform_7, window_bounds = array<i64: 32, 16>}, {pipeline_mode = #tpu.pipeline_mode<synchronous>, transform_indices = @transform_8, window_bounds = array<i64: 32, 1>}, {transform_indices = @transform_9, window_bounds = array<i64: 1, 32, 128>}]} {
    %c0_i32 = arith.constant 0 : i32
    %0 = arith.cmpi eq, %arg2, %c0_i32 : i32
    %1 = arith.extui %0 : i1 to i32
    %c0_i32_0 = arith.constant 0 : i32
    %2 = arith.cmpi ne, %1, %c0_i32_0 : i32
    scf.if %2 {
      %c0_22 = arith.constant 0 : index
      %c0_23 = arith.constant 0 : index
      %c0_24 = arith.constant 0 : index
      %39 = vector.load %arg3[%c0_22, %c0_23, %c0_24] : memref<1x32x128xf32, #tpu.memory_space<vmem>>, vector<1x32x128xf32>
      %40 = vector.shape_cast %39 : vector<1x32x128xf32> to vector<32x128xf32>
      %41 = arith.truncf %40 : vector<32x128xf32> to vector<32x128xbf16>
      %c0_25 = arith.constant 0 : index
      %c0_26 = arith.constant 0 : index
      %42 = vector.load %arg5[%c0_25, %c0_26] : memref<64x32xbf16, #tpu.memory_space<vmem>>, vector<64x32xbf16>
      %cst_27 = arith.constant dense<0.000000e+00> : vector<64x128xf32>
      %43 = tpu.matmul %42, %41, %cst_27 {dimension_numbers = #tpu.dot_dimension_numbers<[1], [0], [0], [1], [0, 0, 1, 1], [], []>} : vector<64x32xbf16>, vector<32x128xbf16>, vector<64x128xf32> -> vector<64x128xf32>
      %c0_28 = arith.constant 0 : index
      %c0_29 = arith.constant 0 : index
      %44 = vector.load %arg6[%c0_28, %c0_29] : memref<64x1xf32, #tpu.memory_space<vmem>>, vector<64x1xf32>
      %45 = vector.broadcast %44 : vector<64x1xf32> to vector<64x128xf32>
      %46 = arith.addf %43, %45 : vector<64x128xf32>
      %cst_30 = arith.constant 0.000000e+00 : f32
      %47 = vector.broadcast %cst_30 : f32 to vector<64x128xf32>
      %48 = arith.maximumf %46, %47 : vector<64x128xf32>
      %49 = vector.extract_strided_slice %48 {offsets = [0, 0], sizes = [32, 128], strides = [1, 1]} : vector<64x128xf32> to vector<32x128xf32>
      %50 = arith.truncf %49 : vector<32x128xf32> to vector<32x128xbf16>
      %c0_31 = arith.constant 0 : index
      %c0_32 = arith.constant 0 : index
      %51 = vector.load %arg13[%c0_31, %c0_32] : memref<32x128xbf16, #tpu.memory_space<vmem>>, vector<32x128xbf16>
      tpu.vector_store %arg13[%c0_31, %c0_32], %50 {strides = array<i32>} : memref<32x128xbf16, #tpu.memory_space<vmem>>, vector<32x128xbf16>,
      %52 = vector.extract_strided_slice %48 {offsets = [32, 0], sizes = [32, 128], strides = [1, 1]} : vector<64x128xf32> to vector<32x128xf32>
      %53 = arith.truncf %52 : vector<32x128xf32> to vector<32x128xbf16>
      %c0_33 = arith.constant 0 : index
      %c0_34 = arith.constant 0 : index
      %54 = vector.load %arg14[%c0_33, %c0_34] : memref<32x128xbf16, #tpu.memory_space<vmem>>, vector<32x128xbf16>
      tpu.vector_store %arg14[%c0_33, %c0_34], %53 {strides = array<i32>} : memref<32x128xbf16, #tpu.memory_space<vmem>>, vector<32x128xbf16>,
      %cst_35 = arith.constant 0xFF800000 : f32
      %55 = vector.broadcast %cst_35 : f32 to vector<1x128xf32>
      %c0_36 = arith.constant 0 : index
      %c0_37 = arith.constant 0 : index
      %56 = vector.load %arg15[%c0_36, %c0_37] : memref<1x128xf32, #tpu.memory_space<vmem>>, vector<1x128xf32>
      tpu.vector_store %arg15[%c0_36, %c0_37], %55 {strides = array<i32>} : memref<1x128xf32, #tpu.memory_space<vmem>>, vector<1x128xf32>,
      %cst_38 = arith.constant 0.000000e+00 : f32
      %57 = vector.broadcast %cst_38 : f32 to vector<32x128xf32>
      %c0_39 = arith.constant 0 : index
      %c0_40 = arith.constant 0 : index
      %58 = vector.load %arg16[%c0_39, %c0_40] : memref<32x128xf32, #tpu.memory_space<vmem>>, vector<32x128xf32>
      tpu.vector_store %arg16[%c0_39, %c0_40], %57 {strides = array<i32>} : memref<32x128xf32, #tpu.memory_space<vmem>>, vector<32x128xf32>,
    } else {
    }
    %c0 = arith.constant 0 : index
    %c0_1 = arith.constant 0 : index
    %c0_2 = arith.constant 0 : index
    %3 = vector.load %arg4[%c0, %c0_1, %c0_2] : memref<1x32x128xf32, #tpu.memory_space<vmem>>, vector<1x32x128xf32>
    %4 = vector.shape_cast %3 : vector<1x32x128xf32> to vector<32x128xf32>
    %5 = arith.truncf %4 : vector<32x128xf32> to vector<32x128xbf16>
    %c0_3 = arith.constant 0 : index
    %c0_4 = arith.constant 0 : index
    %6 = vector.load %arg7[%c0_3, %c0_4] : memref<64x32xbf16, #tpu.memory_space<vmem>>, vector<64x32xbf16>
    %cst = arith.constant dense<0.000000e+00> : vector<64x128xf32>
    %7 = tpu.matmul %6, %5, %cst {dimension_numbers = #tpu.dot_dimension_numbers<[1], [0], [0], [1], [0, 0, 1, 1], [], []>} : vector<64x32xbf16>, vector<32x128xbf16>, vector<64x128xf32> -> vector<64x128xf32>
    %c0_5 = arith.constant 0 : index
    %c0_6 = arith.constant 0 : index
    %8 = vector.load %arg8[%c0_5, %c0_6] : memref<64x1xf32, #tpu.memory_space<vmem>>, vector<64x1xf32>
    %9 = vector.broadcast %8 : vector<64x1xf32> to vector<64x128xf32>
    %10 = arith.addf %7, %9 : vector<64x128xf32>
    %11 = vector.extract_strided_slice %10 {offsets = [0, 0], sizes = [32, 128], strides = [1, 1]} : vector<64x128xf32> to vector<32x128xf32>
    %cst_7 = arith.constant 0.000000e+00 : f32
    %12 = vector.broadcast %cst_7 : f32 to vector<32x128xf32>
    %13 = arith.maximumf %11, %12 : vector<32x128xf32>
    %14 = arith.truncf %13 : vector<32x128xf32> to vector<32x128xbf16>
    %15 = vector.extract_strided_slice %10 {offsets = [32, 0], sizes = [32, 128], strides = [1, 1]} : vector<64x128xf32> to vector<32x128xf32>
    %16 = arith.truncf %15 : vector<32x128xf32> to vector<32x128xbf16>
    %c0_8 = arith.constant 0 : index
    %c0_9 = arith.constant 0 : index
    %17 = vector.load %arg13[%c0_8, %c0_9] : memref<32x128xbf16, #tpu.memory_space<vmem>>, vector<32x128xbf16>
    %cst_10 = arith.constant dense<0.000000e+00> : vector<128x128xf32>
    %18 = tpu.matmul %14, %17, %cst_10 {dimension_numbers = #tpu.dot_dimension_numbers<[0], [0], [1], [1], [0, 1, 1, 1], [], []>} : vector<32x128xbf16>, vector<32x128xbf16>, vector<128x128xf32> -> vector<128x128xf32>
    %c0_11 = arith.constant 0 : index
    %c0_12 = arith.constant 0 : index
    %19 = vector.load %arg15[%c0_11, %c0_12] : memref<1x128xf32, #tpu.memory_space<vmem>>, vector<1x128xf32>
    %cst_13 = arith.constant dense<0xFF800000> : vector<128xf32>
    %20 = vector.multi_reduction <maximumf>, %18, %cst_13 [0] : vector<128x128xf32> to vector<128xf32>
    %21 = vector.shape_cast %20 : vector<128xf32> to vector<1x128xf32>
    %22 = arith.maximumf %19, %21 : vector<1x128xf32>
    %23 = arith.subf %19, %22 : vector<1x128xf32>
    %24 = math.exp %23 : vector<1x128xf32>
    %25 = vector.broadcast %22 : vector<1x128xf32> to vector<128x128xf32>
    %26 = arith.subf %18, %25 : vector<128x128xf32>
    %27 = math.exp %26 : vector<128x128xf32>
    %28 = arith.truncf %27 : vector<128x128xf32> to vector<128x128xbf16>
    %c0_14 = arith.constant 0 : index
    %c0_15 = arith.constant 0 : index
    %29 = vector.load %arg16[%c0_14, %c0_15] : memref<32x128xf32, #tpu.memory_space<vmem>>, vector<32x128xf32>
    %30 = vector.broadcast %24 : vector<1x128xf32> to vector<32x128xf32>
    %31 = arith.mulf %30, %29 : vector<32x128xf32>
    %cst_16 = arith.constant dense<0.000000e+00> : vector<32x128xf32>
    %32 = tpu.matmul %16, %28, %cst_16 {dimension_numbers = #tpu.dot_dimension_numbers<[1], [0], [0], [1], [0, 0, 1, 1], [], []>} : vector<32x128xbf16>, vector<128x128xbf16>, vector<32x128xf32> -> vector<32x128xf32>
    %33 = arith.addf %31, %32 : vector<32x128xf32>
    %c0_17 = arith.constant 0 : index
    %c0_18 = arith.constant 0 : index
    %34 = vector.load %arg16[%c0_17, %c0_18] : memref<32x128xf32, #tpu.memory_space<vmem>>, vector<32x128xf32>
    tpu.vector_store %arg16[%c0_17, %c0_18], %33 {strides = array<i32>} : memref<32x128xf32, #tpu.memory_space<vmem>>, vector<32x128xf32>,
    %c0_19 = arith.constant 0 : index
    %c0_20 = arith.constant 0 : index
    %35 = vector.load %arg15[%c0_19, %c0_20] : memref<1x128xf32, #tpu.memory_space<vmem>>, vector<1x128xf32>
    tpu.vector_store %arg15[%c0_19, %c0_20], %22 {strides = array<i32>} : memref<1x128xf32, #tpu.memory_space<vmem>>, vector<1x128xf32>,
    %c1_i32 = arith.constant 1 : i32
    %36 = arith.cmpi eq, %arg2, %c1_i32 : i32
    %37 = arith.extui %36 : i1 to i32
    %c0_i32_21 = arith.constant 0 : i32
    %38 = arith.cmpi ne, %37, %c0_i32_21 : i32
    scf.if %38 {
      %c0_22 = arith.constant 0 : index
      %c0_23 = arith.constant 0 : index
      %39 = vector.load %arg16[%c0_22, %c0_23] : memref<32x128xf32, #tpu.memory_space<vmem>>, vector<32x128xf32>
      %40 = vector.extract_strided_slice %39 {offsets = [16, 0], sizes = [1, 128], strides = [1, 1]} : vector<32x128xf32> to vector<1x128xf32>
      %41 = vector.extract_strided_slice %39 {offsets = [0, 0], sizes = [16, 128], strides = [1, 1]} : vector<32x128xf32> to vector<16x128xf32>
      %42 = tpu.reciprocal %40 {approx = true} : vector<1x128xf32> -> vector<1x128xf32>
      %43 = vector.broadcast %42 : vector<1x128xf32> to vector<16x128xf32>
      %44 = arith.mulf %41, %43 : vector<16x128xf32>
      %45 = arith.truncf %44 : vector<16x128xf32> to vector<16x128xbf16>
      %c0_24 = arith.constant 0 : index
      %c0_25 = arith.constant 0 : index
      %46 = vector.load %arg10[%c0_24, %c0_25] : memref<32x16xbf16, #tpu.memory_space<vmem>>, vector<32x16xbf16>
      %cst_26 = arith.constant dense<0.000000e+00> : vector<32x128xf32>
      %47 = tpu.matmul %46, %45, %cst_26 {dimension_numbers = #tpu.dot_dimension_numbers<[1], [0], [0], [1], [0, 0, 1, 1], [], []>} : vector<32x16xbf16>, vector<16x128xbf16>, vector<32x128xf32> -> vector<32x128xf32>
      %c0_27 = arith.constant 0 : index
      %c0_28 = arith.constant 0 : index
      %48 = vector.load %arg9[%c0_27, %c0_28] : memref<32x32xbf16, #tpu.memory_space<vmem>>, vector<32x32xbf16>
      %c0_29 = arith.constant 0 : index
      %c0_30 = arith.constant 0 : index
      %49 = vector.load %arg14[%c0_29, %c0_30] : memref<32x128xbf16, #tpu.memory_space<vmem>>, vector<32x128xbf16>
      %cst_31 = arith.constant dense<0.000000e+00> : vector<32x128xf32>
      %50 = tpu.matmul %48, %49, %cst_31 {dimension_numbers = #tpu.dot_dimension_numbers<[1], [0], [0], [1], [0, 0, 1, 1], [], []>} : vector<32x32xbf16>, vector<32x128xbf16>, vector<32x128xf32> -> vector<32x128xf32>
      %51 = arith.addf %47, %50 : vector<32x128xf32>
      %c0_32 = arith.constant 0 : index
      %c0_33 = arith.constant 0 : index
      %52 = vector.load %arg11[%c0_32, %c0_33] : memref<32x1xf32, #tpu.memory_space<vmem>>, vector<32x1xf32>
      %53 = vector.broadcast %52 : vector<32x1xf32> to vector<32x128xf32>
      %54 = arith.addf %51, %53 : vector<32x128xf32>
      %cst_34 = arith.constant 0.000000e+00 : f32
      %55 = vector.broadcast %cst_34 : f32 to vector<32x128xf32>
      %56 = arith.maximumf %54, %55 : vector<32x128xf32>
      %57 = arith.truncf %56 : vector<32x128xf32> to vector<32x128xbf16>
      %c0_35 = arith.constant 0 : index
      %c0_36 = arith.constant 0 : index
      %c0_37 = arith.constant 0 : index
      %58 = vector.load %arg12[%c0_35, %c0_36, %c0_37] : memref<1x32x128xbf16, #tpu.memory_space<vmem>>, vector<1x32x128xbf16>
      %59 = vector.shape_cast %58 : vector<1x32x128xbf16> to vector<32x128xbf16>
      %60 = vector.shape_cast %57 : vector<32x128xbf16> to vector<1x32x128xbf16>
      tpu.vector_store %arg12[%c0_35, %c0_36, %c0_37], %60 {strides = array<i32>} : memref<1x32x128xbf16, #tpu.memory_space<vmem>>, vector<1x32x128xbf16>,
    } else {
    }
    return
  }
  func.func @transform_0(%arg0: i32, %arg1: i32, %arg2: i32) -> (i32, i32, i32) {
    %c0_i32 = arith.constant 0 : i32
    %c0_i32_0 = arith.constant 0 : i32
    return %arg0, %c0_i32, %arg1 : i32, i32, i32
  }
  func.func @transform_1(%arg0: i32, %arg1: i32, %arg2: i32) -> (i32, i32, i32) {
    %c0_i32 = arith.constant 0 : i32
    %c0_i32_0 = arith.constant 0 : i32
    return %arg0, %c0_i32, %arg2 : i32, i32, i32
  }
  func.func @transform_2(%arg0: i32, %arg1: i32, %arg2: i32) -> (i32, i32) {
    %c0_i32 = arith.constant 0 : i32
    %c0_i32_0 = arith.constant 0 : i32
    %c0_i32_1 = arith.constant 0 : i32
    return %c0_i32, %c0_i32_0 : i32, i32
  }
  func.func @transform_3(%arg0: i32, %arg1: i32, %arg2: i32) -> (i32, i32) {
    %c0_i32 = arith.constant 0 : i32
    %c0_i32_0 = arith.constant 0 : i32
    %c0_i32_1 = arith.constant 0 : i32
    return %c0_i32, %c0_i32_0 : i32, i32
  }
  func.func @transform_4(%arg0: i32, %arg1: i32, %arg2: i32) -> (i32, i32) {
    %c0_i32 = arith.constant 0 : i32
    %c0_i32_0 = arith.constant 0 : i32
    %c0_i32_1 = arith.constant 0 : i32
    return %c0_i32, %c0_i32_0 : i32, i32
  }
  func.func @transform_5(%arg0: i32, %arg1: i32, %arg2: i32) -> (i32, i32) {
    %c0_i32 = arith.constant 0 : i32
    %c0_i32_0 = arith.constant 0 : i32
    %c0_i32_1 = arith.constant 0 : i32
    return %c0_i32, %c0_i32_0 : i32, i32
  }
  func.func @transform_6(%arg0: i32, %arg1: i32, %arg2: i32) -> (i32, i32) {
    %c0_i32 = arith.constant 0 : i32
    %c0_i32_0 = arith.constant 0 : i32
    %c0_i32_1 = arith.constant 0 : i32
    return %c0_i32, %c0_i32_0 : i32, i32
  }
  func.func @transform_7(%arg0: i32, %arg1: i32, %arg2: i32) -> (i32, i32) {
    %c0_i32 = arith.constant 0 : i32
    %c0_i32_0 = arith.constant 0 : i32
    %c0_i32_1 = arith.constant 0 : i32
    return %c0_i32, %c0_i32_0 : i32, i32
  }
  func.func @transform_8(%arg0: i32, %arg1: i32, %arg2: i32) -> (i32, i32) {
    %c0_i32 = arith.constant 0 : i32
    %c0_i32_0 = arith.constant 0 : i32
    %c0_i32_1 = arith.constant 0 : i32
    return %c0_i32, %c0_i32_0 : i32, i32
  }
  func.func @transform_9(%arg0: i32, %arg1: i32, %arg2: i32) -> (i32, i32, i32) {
    %c0_i32 = arith.constant 0 : i32
    %c0_i32_0 = arith.constant 0 : i32
    return %arg0, %c0_i32, %arg1 : i32, i32, i32
  }
}

</mosaic_0001>

<bundles_post_ra>
// kernel: tpu_custom_call.1
= control target key start
LH: loop header
LB: loop body
LE: loop exit
PB: predicated region body
PF: predicated region fallthrough
CT: control target
= control target key end

     0   :  { %s2395_s0 = inlined_call_operand.vmem [shape: f32[2,32,256], index: 0, kind: input, shape index: {}]   ;;  %s2396_s1 = inlined_call_operand.vmem [shape: f32[2,32,256], index: 1, kind: input, shape index: {}]   ;;  %s2397_s2 = inlined_call_operand.vmem [shape: bf16[64,32], index: 2, kind: input, shape index: {}]   ;;  %s2398_s3 = inlined_call_operand.vmem [shape: f32[64,1], index: 3, kind: input, shape index: {}]   ;;  %s2399_s4 = inlined_call_operand.vmem [shape: bf16[64,32], index: 4, kind: input, shape index: {}]   ;;  %s2400_s5 = inlined_call_operand.vmem [shape: f32[64,1], index: 5, kind: input, shape index: {}]   ;;  %s2401_s6 = inlined_call_operand.vmem [shape: bf16[32,32], index: 6, kind: input, shape index: {}]   ;;  %s2402_s7 = inlined_call_operand.vmem [shape: bf16[32,16], index: 7, kind: input, shape index: {}]   ;;  %s2403_s8 = inlined_call_operand.vmem [shape: f32[32,1], index: 8, kind: input, shape index: {}]   ;;  %s2404_s9 = inlined_call_operand.hbm [shape: bf16[2,32,256], index: 9, kind: output, shape index: {}]  }
   0x1   :  { %2413 = sst [smem:[#allocation18_spill]] %s2395_s0 }
   0x2   :  { %2414 = sst [smem:[#allocation19_spill]] %s2396_s1 }
   0x3   :  { %2415 = sst [smem:[#allocation20_spill]] %s2397_s2 }
   0x4   :  { %2416 = sst [smem:[#allocation21_spill]] %s2402_s7 }
   0x5   :  { %2417 = sst [smem:[#allocation22_spill]] %s2403_s8 }
   0x6   :  { %2418 = sst [smem:[#allocation23_spill]] %s2404_s9 }
   0x7   :  { %14 = vsyncpa [#allocation9], 0 }
   0x8   :  { %16 = vsyncpa [#allocation9 + $0x1], 0  ;;  %s2006_s30 = smov 0   ;;  %s2008_s10 = smov 0  }
   0x9   :  { %s2010_s11 = smov 0   ;;  %s2012_s12 = smov 0  }
   0xa   :  { %s2014_s13 = smov 0   ;;  %s2016_s14 = smov 0  }
   0xb   :  { %s2018_s15 = smov 0   ;;  %s2020_s16 = smov 0  }
   0xc   :  { %s2022_s17 = smov 0   ;;  %s2024_s18 = smov 0  }
   0xd   :  { %s2026_s19 = smov 0   ;;  %s2028_s20 = smov 0  }
   0xe LB: > { %2419 = sst [smem:[#allocation11_spill]] %s1901_s30  ;;  %s1457_s21 = sadd.s32 4294967295, %s1945_s20   ;;  %s1945_s20 = sphi %s2028_s20, %s22_s20   ;;  %s1941_s19 = sphi %s2026_s19, %s2455_s19   ;;  %s1937_s18 = sphi %s2024_s18, %s2454_s18   ;;  %s1933_s17 = sphi %s2022_s17, %s2453_s17   ;;  %s1929_s16 = sphi %s2020_s16, %s2452_s16   ;;  %s1925_s15 = sphi %s2018_s15, %s2451_s15   ;;  %s1921_s14 = sphi %s2016_s14, %s2450_s14   ;;  %s1917_s13 = sphi %s2014_s13, %s2449_s13   ;;  %s1913_s12 = sphi %s2012_s12, %s2448_s12   ;;  %s1909_s11 = sphi %s2010_s11, %s2447_s11   ;;  %s1905_s10 = sphi %s2008_s10, %s2446_s10   ;;  %s1901_s30 = sphi %s2006_s30, %s2445_s30  }
   0xf   : > { %2420 = sst [smem:[#allocation12_spill]] %s1925_s15  ;;  %s1458_s22 = sadd.s32 4294967294, %s1945_s20  }
  0x10   : > { %2421 = sst [smem:[#allocation13_spill]] %s1929_s16  ;;  %s34_s23 = sadd.s32 1, %s1933_s17 }
  0x11   : > { %p35_p0 = scmp.ge.s32.totalorder %s34_s23, 2  ;;  %s37_s24 = sadd.s32 1, %s1937_s18 }
  0x12   : > { %s41_s25 = sadd.s32 1, %s1941_s19  ;;  %p57_p1 = scmp.ne.s32.totalorder %s1917_s13, %s1913_s12 }
  0x13   : > { %s2457_s23 = smov (%p35_p0, %s34_s23), 0  ;;  %s2459_s24 = smov (!%p35_p0, %s37_s24), %s1937_s18 }
  0x14   : > { %2422 = sst [smem:[#allocation14_spill]] %s2457_s23  ;;  %s50_s26 = sadd.s32 1, %s1917_s13 }
  0x15   : > { %p58_p2 = scmp.eq.s32.totalorder %s1945_s20, 0  ;;  %p39_p3 = scmp.ge.s32.totalorder %s2459_s24, 2 }
  0x16   : > { %s74_s27 = ssub.s32 %s1933_s17, %s2457_s23  ;;  %p85_p5 = scmp.ne.s32.totalorder %s1909_s11, %s1905_s10 }
  0x17   : > { %p2083_p4 = por %p58_p2, %p57_p1  ;;  %s2461_s24 = smov (%p39_p3, %s2459_s24), 0 }
  0x18   : > { %2424 = sst [smem:[#allocation15_spill]] %s2461_s24  ;;  %s2463_s25 = smov (!%p39_p3, %s41_s25), %s1941_s19 }
  0x19   : > { %s46_s29 = ssub.s32 %s1937_s18, %s2461_s24  ;;  %p2094_p6 = por %p85_p5, %p58_p2 }
  0x1a   : > { %p43_p7 = scmp.ge.s32.totalorder %s2463_s25, 2  ;;  %p264_p8 = scmp.eq.s32.totalorder %s1457_s21, 7 }
  0x1b   : > { %p269_p9 = scmp.ne.s32.totalorder %s1913_s12, %s1901_s30  ;;  %p270_p10 = scmp.eq.s32.totalorder %s1458_s22, 7 }
  0x1c   : > { %s2465_s25 = smov (%p43_p7, %s2463_s25), 0  ;;  %p2105_p11 = por %p264_p8, %p57_p1 }
  0x1d   : > { %2426 = sst [smem:[#allocation16_spill]] %s2465_s25  ;;  %p2109_p12 = por %p270_p10, %p269_p9 }
  0x1e   : > { %s45_s24 = ssub.s32 %s1941_s19, %s2465_s25  ;;  %s78_s16 = sadd.s32 1, %s1909_s11 }
  0x1f   : > { %s2428_s15 = scalar_select %p2109_p12, 1, 0 }
  0x20   : > { %s47_s8 = sor.u32 %s46_s29, %s45_s24  ;;  %s75_s7 = sor.u32 %s74_s27, %s45_s24 }
  0x21   : > { %2429 = sst [smem:[#allocation17_spill]] %s2428_s15  ;;  %p48_p13 = scmp.eq.s32.totalorder %s47_s8, 0 }
  0x22   : > { %p76_p0 = scmp.eq.s32.totalorder %s75_s7, 0  ;;  %p1460_p2 = scmp.ge.s32.totalorder %s1945_s20, 8 }
  0x23   : > { %s2117_s21 = scalar_select %p48_p13, %s1917_s13, %s50_s26  }
  0x24   : > { %s2120_s22 = scalar_select %p76_p0, %s1909_s11, %s78_s16  }
  0x25   : > { %307 = sbr.rel (%p1460_p2) target bundleno = 68 (0x44), region = 44 }
  0x2c   : > { %310 = sbr.rel (!%p2083_p4) target bundleno = 56 (0x38), region = 48  ;;  %s312_s15 = sand.u32 (%p2083_p4), 1, %s1917_s13  }
  0x2d   : > { %s1462_s25 = sshll.u32 (%p2083_p4), %s1941_s19, 3  ;;  %s1461_s30 = sshll.u32 (%p2083_p4), %s312_s15, 5 }
  0x2e   : > { %s316_s29 = sadd.s32 (%p2083_p4), %s1937_s18, %s1462_s25  ;;  %s2430_s0 = sld [smem:[#allocation18_spill]] (%p2083_p4) }
  0x2f   : > { %s1463_s24 = sshll.u32 (%p2083_p4), %s316_s29, 3  ;;  %s314_s16 = scalar_lea.vmem (%p2083_p4), [#allocation6], %s1461_s30 }
  0x34   : > { %s318_s26 = scalar_lea.vmem %s2430_s0, %s1463_s24 }
  0x35   : > { %v352_v0 = vld [vmem:[%s318_s26] sm:$0xff]  ;;  %v354_v1 = vld [vmem:[%s318_s26 + $0x10] sm:$0xff] }
  0x36   : > { %v356_v2 = vld [vmem:[%s318_s26 + $0x20] sm:$0xff]  ;;  %353 = vst [vmem:[%s314_s16] sm:$0xff] %v352_v0  ;;  %355 = vst [vmem:[%s314_s16 + $0x8] sm:$0xff] %v354_v1  ;;  %v358_v3 = vld [vmem:[%s318_s26 + $0x30] sm:$0xff] }
  0x37   : > { %357 = vst [vmem:[%s314_s16 + $0x10] sm:$0xff] %v356_v2  ;;  %359 = vst [vmem:[%s314_s16 + $0x18] sm:$0xff] %v358_v3 }
  0x38 PF: > { %365 = sbr.rel (!%p2094_p6) target bundleno = 68 (0x44), region = 86  ;;  %s367_s15 = sand.u32 (%p2094_p6), 1, %s1909_s11  }
  0x39   : > { %s1465_s25 = sshll.u32 (%p2094_p6), %s1941_s19, 3  ;;  %s1464_s27 = sshll.u32 (%p2094_p6), %s367_s15, 5 }
  0x3a   : > { %s371_s28 = sadd.s32 (%p2094_p6), %s1933_s17, %s1465_s25  ;;  %s2431_s1 = sld [smem:[#allocation19_spill]] (%p2094_p6) }
  0x3b   : > { %s1466_s29 = sshll.u32 (%p2094_p6), %s371_s28, 3  ;;  %s369_s7 = scalar_lea.vmem (%p2094_p6), [#allocation7], %s1464_s27 }
  0x40   : > { %s373_s30 = scalar_lea.vmem %s2431_s1, %s1466_s29 }
  0x41   : > { %v407_v4 = vld [vmem:[%s373_s30] sm:$0xff]  ;;  %v409_v5 = vld [vmem:[%s373_s30 + $0x10] sm:$0xff] }
  0x42   : > { %v411_v6 = vld [vmem:[%s373_s30 + $0x20] sm:$0xff]  ;;  %408 = vst [vmem:[%s369_s7] sm:$0xff] %v407_v4  ;;  %410 = vst [vmem:[%s369_s7 + $0x8] sm:$0xff] %v409_v5  ;;  %v413_v7 = vld [vmem:[%s373_s30 + $0x30] sm:$0xff] }
  0x43   : > { %412 = vst [vmem:[%s369_s7 + $0x10] sm:$0xff] %v411_v6  ;;  %414 = vst [vmem:[%s369_s7 + $0x18] sm:$0xff] %v413_v7 }
  0x44 PF: > { %p1467_p1 = scmp.ge.s32.totalorder %s1945_s20, 1  ;;  %p419_p3 = scmp.lt.s32.totalorder %s1945_s20, 9 }
  0x46   : > { %p420_p4 = pnand %p1467_p1, %p419_p3 }
  0x47   : > { %s2142_s9 = sand.u32 (!%p420_p4), 1, %s1913_s12   ;;  %s433_s26 = sand.u32 (!%p420_p4), 1, %s1905_s10  }
  0x48   : > { %423 = sbr.rel (%p420_p4) target bundleno = 1462 (0x5b6), region = 124  ;;  %s1468_s16 = sshll.u32 (!%p420_p4), %s2142_s9, 5 }
  0x49   : > { %s1469_s15 = sshll.u32 (!%p420_p4), %s433_s26, 5  ;;  %s1470_s25 = sshll.u32 (!%p420_p4), %s2142_s9, 4 }
  0x4a   : > { %s428_s27 = scalar_lea.vmem (!%p420_p4), [#allocation6], %s1468_s16  ;;  %s2147_s28 = scalar_lea.vmem (!%p420_p4), [#allocation7], %s1469_s15 }
  0x4b   : > { %s2149_s29 = scalar_lea.vmem (!%p420_p4), [#allocation8], %s1470_s25  ;;  %p1471_p5 = scmp.ne.s32.totalorder (!%p420_p4), %s1921_s14, 0 }
  0x4f   : > { %476 = sbr.rel (%p1471_p5) target bundleno = 312 (0x138), region = 136  ;;  %v477_v8 = vld [vmem:[%s428_s27] sm:$0xff] (!%p1471_p5)  ;;  %v478_v9 = vld [vmem:[%s428_s27 + $0x8] sm:$0xff] (!%p1471_p5)  ;;  %v479_v10 = vld [vmem:[%s428_s27 + $0x10] sm:$0xff] (!%p1471_p5)  ;;  %v1947_v13 = vmov (!%p1471_p5), 0   ;;  %s2432_s2 = sld [smem:[#allocation20_spill]] (!%p1471_p5) }
  0x50   : > { %v481_v11 = vpack.c.bf16 (!%p1471_p5), %v478_v9, %v477_v8  ;;  %v480_v12 = vld [vmem:[%s428_s27 + $0x18] sm:$0xff] (!%p1471_p5)  ;;  %1766 = vset.pattern.permute.xlu1 (!%p1471_p5), %v1947_v13  ;;  %1765 = vset.pattern.permute.xlu0 (!%p1471_p5), %v1947_v13  ;;  %vm559_vm0 = vcmask (!%p1471_p5), 261120   ;;  %v493_v17 = vld [vmem:[%s2398_s3 + $0x10] sm:$0xff] (!%p1471_p5)  ;;  %v492_v22 = vld [vmem:[%s2398_s3 + $0x8] sm:$0xff] (!%p1471_p5)  ;;  %v1948_v27 = vmov (!%p1471_p5), -inf   ;;  %v1949_v28 = vmov (!%p1471_p5), 0.0  }
  0x51   : > { %v482_v14 = vpack.c.bf16 (!%p1471_p5), %v480_v12, %v479_v10  ;;  %v491_v18 = vld [vmem:[%s2398_s3] sm:$0xff] (!%p1471_p5)  ;;  %511 = vperm.xlu1 (!%p1471_p5), %1766, %v493_v17   ;;  %v494_v21 = vld [vmem:[%s2398_s3 + $0x18] sm:$0xff] (!%p1471_p5)  ;;  %v496_v23 = vld [vmem:[%s2398_s3 + $0x28] sm:$0xff] (!%p1471_p5)  ;;  %653 = vst [vmem:[#allocation4] sm:$0x1] (!%p1471_p5), %v1948_v27 }
  0x52   : > { %1568 = vmatprep.subr.bf16.mxu0 (!%p1471_p5), %v481_v11  ;;  %1646 = vmatprep.subr.bf16.mxu1 (!%p1471_p5), %v481_v11  ;;  %v495_v24 = vld [vmem:[%s2398_s3 + $0x20] sm:$0xff] (!%p1471_p5)  ;;  %v498_v25 = vld [vmem:[%s2398_s3 + $0x38] sm:$0xff] (!%p1471_p5)  ;;  %v497_v26 = vld [vmem:[%s2398_s3 + $0x30] sm:$0xff] (!%p1471_p5)  ;;  %654 = vst [vmem:[#allocation5] sm:$0xff] (!%p1471_p5), %v1949_v28 }
  0x53   : > { %1569 = vmatpush3.bf16.msra.mxu0 (!%p1471_p5), %v481_v11  ;;  %1648 = vmatpush3.bf16.msra.mxu1 (!%p1471_p5), %v481_v11  ;;  %655 = vst [vmem:[#allocation5 + $0x8] sm:$0xff] (!%p1471_p5), %v1949_v28  ;;  %656 = vst [vmem:[#allocation5 + $0x10] sm:$0xff] (!%p1471_p5), %v1949_v28 }
  0x54   : > { %1570 = vmatprep.subr.bf16.mxu0 (!%p1471_p5), %v482_v14  ;;  %1647 = vmatprep.subr.bf16.mxu1 (!%p1471_p5), %v482_v14  ;;  %657 = vst [vmem:[#allocation5 + $0x18] sm:$0xff] (!%p1471_p5), %v1949_v28 }
  0x55   : > { %v1767_v15 = vld [vmem:[%s2432_s2] sm:$0xff] (!%p1471_p5)   ;;  %v1768_v16 = vld [vmem:[%s2432_s2 + $0x10] sm:$0xff] (!%p1471_p5)   ;;  %v1769_v19 = vld [vmem:[%s2432_s2 + $0x8] sm:$0xff] (!%p1471_p5)   ;;  %501 = vperm.xlu0 (!%p1471_p5), %1765, %v491_v18   ;;  %516 = vperm.xlu1 (!%p1471_p5), %1766, %v494_v21  }
  0x56   : > { %1572 = vmatprep.mubr.msk.bf16.mxu0 %vm559_vm0, %v1767_v15  ;;  %1576 = vmatprep.mubr.msk.bf16.mxu1 %vm559_vm0, %v1768_v16  ;;  %v1770_v20 = vld [vmem:[%s2432_s2 + $0x18] sm:$0xff]  }
  0x57   : > { %1571 = vmatpush3.bf16.msra.mxu0 %v482_v14  ;;  %1649 = vmatpush3.bf16.msra.mxu1 %v482_v14 }
  0x59   : > { %506 = vperm.xlu0 %1765, %v492_v22   ;;  %526 = vperm.xlu1 %1766, %v496_v23  }
  0x5a   : > { %1573 = vmatmul.mubr.msk.bf16.vlgmr.msra.gmra.mrb[0].mxu0 %vm559_vm0, %v1769_v19  ;;  %1577 = vmatmul.mubr.msk.bf16.vlgmr.msra.gmra.mrb[0].mxu1 %vm559_vm0, %v1770_v20 }
  0x5d   : > { %521 = vperm.xlu0 %1765, %v495_v24   ;;  %536 = vperm.xlu1 %1766, %v498_v25  }
  0x61   : > { %531 = vperm.xlu0 %1765, %v497_v26  }
  0xd0   : > { %v512_v29 = vpop.permute.xlu1 %511 }
  0xd4   : > { %v502_v30 = vpop.permute.xlu0 %501  ;;  %v517_v31 = vpop.permute.xlu1 %516 }
  0xd8   : > { %v507_v32 = vpop.permute.xlu0 %506  ;;  %v527_v33 = vpop.permute.xlu1 %526 }
  0xdc   : > { %v522_v34 = vpop.permute.xlu0 %521  ;;  %v537_v35 = vpop.permute.xlu1 %536 }
  0xe0   : > { %v532_v36 = vpop.permute.xlu0 %531 }
 0x12d   : > { %v1574_v37 = vpop.f32.mrb[0].mxu0  ;;  %v1578_v38 = vpop.f32.mrb[0].mxu1 }
 0x12e   : > { %v615_v39 = vadd.f32 %v1574_v37, %v512_v29  ;;  %v631_v40 = vadd.f32 %v1578_v38, %v532_v36  ;;  %v606_v41 = vpop.f32.mrb[1].mxu0  ;;  %v622_v42 = vpop.f32.mrb[1].mxu1 }
 0x12f   : > { %v607_v43 = vadd.f32 %v606_v41, %v502_v30  ;;  %v623_v44 = vadd.f32 %v622_v42, %v522_v34  ;;  %v1575_v45 = vpop.f32.mrb[2].mxu0  ;;  %v1579_v46 = vpop.f32.mrb[2].mxu1 }
 0x130   : > { %v618_v47 = vadd.f32 %v1575_v45, %v517_v31  ;;  %v634_v48 = vadd.f32 %v1579_v46, %v537_v35  ;;  %v609_v49 = vpop.f32.mrb[3].mxu0  ;;  %v625_v50 = vpop.f32.mrb[3].mxu1  ;;  %v639_v53 = vmax.f32 %v615_v39, 0.0  ;;  %v643_v54 = vmax.f32 %v631_v40, 0.0 }
 0x131   : > { %v610_v51 = vadd.f32 %v609_v49, %v507_v32  ;;  %v626_v52 = vadd.f32 %v625_v50, %v527_v33  ;;  %v637_v57 = vmax.f32 %v607_v43, 0.0  ;;  %v641_v58 = vmax.f32 %v623_v44, 0.0 }
 0x132   : > { %v640_v55 = vmax.f32 %v618_v47, 0.0  ;;  %v644_v56 = vmax.f32 %v634_v48, 0.0 }
 0x133   : > { %v638_v59 = vmax.f32 %v610_v51, 0.0  ;;  %v642_v60 = vmax.f32 %v626_v52, 0.0 }
 0x134   : > { %v646_v61 = vpack.c.bf16 %v640_v55, %v639_v53  ;;  %v650_v62 = vpack.c.bf16 %v644_v56, %v643_v54 }
 0x135   : > { %v645_v63 = vpack.c.bf16 %v638_v59, %v637_v57  ;;  %v649_v0 = vpack.c.bf16 %v642_v60, %v641_v58 }
 0x136   : > { %648 = vst [vmem:[#allocation2 + $0x8] sm:$0xff] %v646_v61  ;;  %652 = vst [vmem:[#allocation3 + $0x8] sm:$0xff] %v650_v62 }
 0x137   : > { %647 = vst [vmem:[#allocation2] sm:$0xff] %v645_v63  ;;  %651 = vst [vmem:[#allocation3] sm:$0xff] %v649_v0 }
 0x138 PF: > { %v658_v1 = vld [vmem:[%s2147_s28] sm:$0xff]  ;;  %v659_v2 = vld [vmem:[%s2147_s28 + $0x8] sm:$0xff]  ;;  %v660_v3 = vld [vmem:[%s2147_s28 + $0x10] sm:$0xff]  ;;  %vm740_vm1 = vcmask 261120   ;;  %v1950_v6 = vmov 0   ;;  %p1496_p6 = scmp.ne.s32.totalorder %s1921_s14, 1 }
 0x139   : > { %v662_v4 = vpack.c.bf16 %v659_v2, %v658_v1  ;;  %v661_v5 = vld [vmem:[%s2147_s28 + $0x18] sm:$0xff]  ;;  %1772 = vset.pattern.permute.xlu1 %v1950_v6  ;;  %1771 = vset.pattern.permute.xlu0 %v1950_v6  ;;  %v674_v9 = vld [vmem:[%s2400_s5 + $0x10] sm:$0xff]  ;;  %v1774_v11 = vld [vmem:[%s2399_s4 + $0x8] sm:$0xff]   ;;  %vm1225_vm2 = vcmask (!%p1496_p6), 130048   ;;  %s2433_s25 = sld [smem:[#allocation21_spill]] (!%p1496_p6)  ;;  %s2434_s30 = sld [smem:[#allocation22_spill]] (!%p1496_p6) }
 0x13a   : > { %v663_v7 = vpack.c.bf16 %v661_v5, %v660_v3  ;;  %v1773_v8 = vld [vmem:[%s2399_s4] sm:$0xff]   ;;  %692 = vperm.xlu1 %1772, %v674_v9   ;;  %v675_v12 = vld [vmem:[%s2400_s5 + $0x18] sm:$0xff]  ;;  %v1775_v13 = vld [vmem:[%s2399_s4 + $0x10] sm:$0xff]  }
 0x13b   : > { %1580 = vmatprep.subr.bf16.mxu0 %v662_v4  ;;  %1584 = vmatprep.mubr.msk.bf16.mxu0 %vm740_vm1, %v1773_v8  ;;  %v672_v10 = vld [vmem:[%s2400_s5] sm:$0xff]  ;;  %v673_v14 = vld [vmem:[%s2400_s5 + $0x8] sm:$0xff]  ;;  %v1776_v16 = vld [vmem:[%s2399_s4 + $0x18] sm:$0xff]  }
 0x13c   : > { %1581 = vmatpush3.bf16.msra.mxu0 %v662_v4  ;;  %682 = vperm.xlu0 %1771, %v672_v10   ;;  %v676_v15 = vld [vmem:[%s2400_s5 + $0x20] sm:$0xff]  ;;  %v677_v17 = vld [vmem:[%s2400_s5 + $0x28] sm:$0xff]  ;;  %v678_v18 = vld [vmem:[%s2400_s5 + $0x30] sm:$0xff] }
 0x13d   : > { %1582 = vmatprep.subr.bf16.mxu0 %v663_v7  ;;  %v679_v19 = vld [vmem:[%s2400_s5 + $0x38] sm:$0xff]  ;;  %v827_v22 = vld [vmem:[#allocation2 + $0x8] sm:$0xff] }
 0x13e   : > { %697 = vperm.xlu1 %1772, %v675_v12   ;;  %v826_v20 = vld [vmem:[#allocation2] sm:$0xff] }
 0x13f   : > { %1592 = vmatprep.subr.bf16.mxu1 %v826_v20  ;;  %s2435_s7 = smov (!%p1496_p6), %s2434_s30 }
 0x140   : > { %1583 = vmatpush3.bf16.msra.mxu0 %v663_v7  ;;  %687 = vperm.xlu0 %1771, %v673_v14  }
 0x141   : > { %1593 = vmatpush3.bf16.msra.mxu1 %v826_v20 }
 0x142   : > { %702 = vperm.xlu1 %1772, %v676_v15   ;;  %1594 = vmatprep.subr.bf16.mxu1 %v827_v22 }
 0x143   : > { %1585 = vmatmul.mubr.msk.bf16.vlgmr.msra.gmra.mrb[0].mxu0 %vm740_vm1, %v1774_v11 }
 0x144   : > { %1588 = vmatprep.mubr.msk.bf16.mxu0 %vm740_vm1, %v1775_v13 }
 0x145   : > { %1595 = vmatpush3.bf16.msra.mxu1 %v827_v22 }
 0x146   : > { %707 = vperm.xlu1 %1772, %v677_v17  }
 0x14a   : > { %712 = vperm.xlu1 %1772, %v678_v18  }
 0x14b   : > { %1589 = vmatmul.mubr.msk.bf16.gmra.mrb[4].mxu0 %vm740_vm1, %v1776_v16 }
 0x14e   : > { %717 = vperm.xlu1 %1772, %v679_v19  }
 0x1b9   : > { %v693_v21 = vpop.permute.xlu1 %692 }
 0x1bb   : > { %v683_v25 = vpop.permute.xlu0 %682 }
 0x1bd   : > { %v698_v23 = vpop.permute.xlu1 %697 }
 0x1bf   : > { %v688_v32 = vpop.permute.xlu0 %687 }
 0x1c1   : > { %v703_v24 = vpop.permute.xlu1 %702 }
 0x1c5   : > { %v708_v26 = vpop.permute.xlu1 %707 }
 0x1c9   : > { %v713_v35 = vpop.permute.xlu1 %712 }
 0x1cd   : > { %v718_v45 = vpop.permute.xlu1 %717 }
 0x216   : > { %v1586_v27 = vpop.f32.mrb[0].mxu0 }
 0x217   : > { %v796_v28 = vadd.f32 %v1586_v27, %v693_v21  ;;  %v787_v29 = vpop.f32.mrb[1].mxu0 }
 0x218   : > { %v788_v30 = vadd.f32 %v787_v29, %v683_v25  ;;  %v1587_v31 = vpop.f32.mrb[2].mxu0 }
 0x219   : > { %v799_v33 = vadd.f32 %v1587_v31, %v698_v23  ;;  %v790_v34 = vpop.f32.mrb[3].mxu0  ;;  %v820_v37 = vmax.f32 %v796_v28, 0.0  ;;  %v992_v31 = vlaneseq }
 0x21a   : > { %v791_v36 = vadd.f32 %v790_v34, %v688_v32  ;;  %v818_v39 = vmax.f32 %v788_v30, 0.0 }
 0x21b   : > { %v821_v38 = vmax.f32 %v799_v33, 0.0  ;;  %v993_v34 = vshrl.u32 %v992_v31, 7 }
 0x21c   : > { %v819_v40 = vmax.f32 %v791_v36, 0.0  ;;  %v965_v36 = vld [vmem:[#allocation4] sm:$0x1] }
 0x21d   : > { %v823_v41 = vpack.c.bf16 %v821_v38, %v820_v37  ;;  %v2274_v38 = vsub.s32 0, %v993_v34 }
 0x21e   : > { %v822_v42 = vpack.c.bf16 %v819_v40, %v818_v39  ;;  %v1590_v43 = vpop.f32.mrb[4].mxu0 }
 0x21f   : > { %v803_v44 = vpop.f32.mrb[5].mxu0  ;;  %v2236_v47 = vadd.f32 %v1590_v43, %v713_v35 }
 0x220   : > { %v1591_v46 = vpop.f32.mrb[6].mxu0  ;;  %828 = vxpose.xlu0.c.b16.start [1/2] (short) %v822_v42, 128  ;;  %v804_v50 = vadd.f32 %v803_v44, %v703_v24 }
 0x221   : > { %v2238_v48 = vadd.f32 %v1591_v46, %v718_v45  ;;  %v806_v49 = vpop.f32.mrb[7].mxu0 }
 0x222   : > { %v807_v51 = vadd.f32 %v806_v49, %v708_v26 }
 0x223   : > { %v825_v52 = vpack.c.bf16 %v2238_v48, %v2236_v47  ;;  %v1148_v47 = vld [vmem:[#allocation3] sm:$0xff] (!%p1496_p6)  ;;  %v1149_v48 = vld [vmem:[#allocation3 + $0x8] sm:$0xff] (!%p1496_p6) }
 0x224   : > { %v824_v53 = vpack.c.bf16 %v807_v51, %v804_v50  ;;  %829 = vxpose.xlu0.c.b16.end [2/2] (short) %v823_v41, 128  ;;  %1632 = vmatprep.subr.bf16.mxu1 (!%p1496_p6), %v1148_v47 }
 0x226   : > { %1628 = vmatprep.mubr.bf16.mxu0 %v824_v53 }
 0x286   : > { %v836_v54 = vpop.trf.xlu0 }
 0x287   : > { %1596 = vmatprep.mubr.msk.bf16.mxu1 %vm740_vm1, %v836_v54 }
 0x28a   : > { %v837_v55 = vpop.trf.xlu0 }
 0x28b   : > { %1597 = vmatmul.mubr.msk.bf16.vlgmr.msra.gmra.mrb[0].mxu1 %vm740_vm1, %v837_v55 }
 0x28c   : > { %1633 = vmatpush3.bf16.msra.mxu1 (!%p1496_p6), %v1148_v47 }
 0x28d   : > { %1634 = vmatprep.subr.bf16.mxu1 (!%p1496_p6), %v1149_v48 }
 0x28e   : > { %v838_v56 = vpop.trf.xlu0 }
 0x28f   : > { %1600 = vmatprep.mubr.msk.bf16.mxu1 %vm740_vm1, %v838_v56 }
 0x290   : > { %1635 = vmatpush3.bf16.msra.mxu1 (!%p1496_p6), %v1149_v48 }
 0x292   : > { %v839_v57 = vpop.trf.xlu0 }
 0x293   : > { %1601 = vmatmul.mubr.msk.bf16.gmra.mrb[4].mxu1 %vm740_vm1, %v839_v57 }
 0x296   : > { %v840_v58 = vpop.trf.xlu0 }
 0x297   : > { %1604 = vmatprep.mubr.msk.bf16.mxu1 %vm740_vm1, %v840_v58 }
 0x29a   : > { %v841_v59 = vpop.trf.xlu0 }
 0x29b   : > { %1605 = vmatmul.mubr.msk.bf16.gmra.mrb[8].mxu1 %vm740_vm1, %v841_v59 }
 0x29e   : > { %v842_v60 = vpop.trf.xlu0 }
 0x29f   : > { %1608 = vmatprep.mubr.msk.bf16.mxu1 %vm740_vm1, %v842_v60 }
 0x2a2   : > { %v843_v61 = vpop.trf.xlu0 }
 0x2a3   : > { %1609 = vmatmul.mubr.msk.bf16.gmra.mrb[12].mxu1 %vm740_vm1, %v843_v61 }
 0x35e   : > { %v1598_v62 = vpop.f32.mrb[0].mxu1 }
 0x35f   : > { %v902_v63 = vpop.f32.mrb[1].mxu1 }
 0x360   : > { %v1599_v0 = vpop.f32.mrb[2].mxu1 }
 0x361   : > { %v905_v1 = vpop.f32.mrb[3].mxu1 }
 0x366   : > { %v2250_v2 = vpop.f32.mrb[4].mxu1 }
 0x367   : > { %v968_v3 = vmax.f32 %v1598_v62, %v2250_v2  ;;  %v918_v4 = vpop.f32.mrb[5].mxu1 }
 0x368   : > { %v966_v5 = vmax.f32 %v902_v63, %v918_v4  ;;  %v2253_v6 = vpop.f32.mrb[6].mxu1 }
 0x369   : > { %v969_v7 = vmax.f32 %v1599_v0, %v2253_v6  ;;  %v921_v8 = vpop.f32.mrb[7].mxu1 }
 0x36a   : > { %v967_v9 = vmax.f32 %v905_v1, %v921_v8 }
 0x36e   : > { %v2256_v10 = vpop.f32.mrb[8].mxu1 }
 0x36f   : > { %v972_v11 = vmax.f32 %v968_v3, %v2256_v10  ;;  %v2259_v12 = vpop.f32.mrb[9].mxu1 }
 0x370   : > { %v970_v13 = vmax.f32 %v966_v5, %v2259_v12  ;;  %v2262_v14 = vpop.f32.mrb[10].mxu1 }
 0x371   : > { %v973_v15 = vmax.f32 %v969_v7, %v2262_v14  ;;  %v937_v16 = vpop.f32.mrb[11].mxu1 }
 0x372   : > { %v971_v17 = vmax.f32 %v967_v9, %v937_v16 }
 0x376   : > { %v2265_v18 = vpop.f32.mrb[12].mxu1 }
 0x377   : > { %v976_v19 = vmax.f32 %v972_v11, %v2265_v18  ;;  %v2268_v20 = vpop.f32.mrb[13].mxu1 }
 0x378   : > { %v974_v21 = vmax.f32 %v970_v13, %v2268_v20  ;;  %v2271_v22 = vpop.f32.mrb[14].mxu1 }
 0x379   : > { %v977_v23 = vmax.f32 %v973_v15, %v2271_v22  ;;  %v953_v24 = vpop.f32.mrb[15].mxu1 }
 0x37a   : > { %v975_v25 = vmax.f32 %v971_v17, %v953_v24 }
 0x37b   : > { %v979_v26 = vmax.f32 %v976_v19, %v977_v23 }
 0x37c   : > { %v978_v27 = vmax.f32 %v974_v21, %v975_v25 }
 0x37e   : > { %v980_v28 = vmax.f32 %v978_v27, %v979_v26 }
 0x380   : > { %v981_v29 = vrot.slane %v980_v28, 4 }
 0x382   : > { %v982_v30 = vmax.f32 %v980_v28, %v981_v29 }
 0x384   : > { %v983_v32 = vrot.slane %v982_v30, 2 }
 0x386   : > { %v984_v33 = vmax.f32 %v982_v30, %v983_v32 }
 0x388   : > { %v985_v35 = vrot.slane %v984_v33, 1 }
 0x38a   : > { %v986_v37 = vmax.f32 %v984_v33, %v985_v35 }
 0x38c   : > { %v987_v39 = vmax.f32 %v965_v36, %v986_v37 }
 0x38e   : > { %v988_v40 = vsub.f32 %v965_v36, %v987_v39  ;;  %v995_v41 = vrot.slane %v987_v39, %v2274_v38  ;;  %1124 = vst [vmem:[#allocation4] sm:$0x1] %v987_v39 }
 0x390   : > { %v989_v42 = vmul.f32 1.442695, %v988_v40  ;;  %v1010_v43 = vsub.f32 %v953_v24, %v995_v41  ;;  %v997_v44 = vsub.f32 %v902_v63, %v995_v41  ;;  %v998_v45 = vsub.f32 %v905_v1, %v995_v41 }
 0x391   : > { %v999_v46 = vsub.f32 %v1598_v62, %v995_v41  ;;  %v1000_v49 = vsub.f32 %v1599_v0, %v995_v41  ;;  %v1001_v50 = vsub.f32 %v918_v4, %v995_v41  ;;  %v1002_v51 = vsub.f32 %v921_v8, %v995_v41 }
 0x392   : > { %1777 = vpow2.f32 %v989_v42  ;;  %v1039_v53 = vmul.f32 1.442695, %v1010_v43  ;;  %v1013_v54 = vmul.f32 1.442695, %v997_v44  ;;  %v1015_v55 = vmul.f32 1.442695, %v998_v45 }
 0x393   : > { %v1017_v56 = vmul.f32 1.442695, %v999_v46  ;;  %v1003_v57 = vsub.f32 %v2250_v2, %v995_v41  ;;  %v1019_v58 = vmul.f32 1.442695, %v1000_v49  ;;  %v1004_v59 = vsub.f32 %v2253_v6, %v995_v41  ;;  %v1053_v42 = vld [vmem:[#allocation5] sm:$0xff]  ;;  %v1056_v43 = vld [vmem:[#allocation5 + $0x18] sm:$0xff] }
 0x394   : > { %1779 = vpow2.f32 %v1039_v53  ;;  %v1005_v60 = vsub.f32 %v2259_v12, %v995_v41  ;;  %v1021_v61 = vmul.f32 1.442695, %v1001_v50  ;;  %v1006_v63 = vsub.f32 %v937_v16, %v995_v41  ;;  %v1054_v45 = vld [vmem:[#allocation5 + $0x8] sm:$0xff] }
 0x395   : > { %1781 = vpow2.f32 %v1013_v54  ;;  %v1007_v62 = vsub.f32 %v2256_v10, %v995_v41  ;;  %v1023_v0 = vmul.f32 1.442695, %v1002_v51  ;;  %v1008_v1 = vsub.f32 %v2262_v14, %v995_v41 }
 0x396   : > { %1783 = vpow2.f32 %v1015_v55  ;;  %v1025_v3 = vmul.f32 1.442695, %v1003_v57  ;;  %v1009_v4 = vsub.f32 %v2268_v20, %v995_v41  ;;  %v1027_v2 = vmul.f32 1.442695, %v1004_v59 }
 0x397   : > { %1785 = vpow2.f32 %v1017_v56  ;;  %v1011_v5 = vsub.f32 %v2265_v18, %v995_v41  ;;  %v1012_v6 = vsub.f32 %v2271_v22, %v995_v41  ;;  %v1029_v7 = vmul.f32 1.442695, %v1005_v60  ;;  %v1055_v41 = vld [vmem:[#allocation5 + $0x10] sm:$0xff] }
 0x398   : > { %1787 = vpow2.f32 %v1019_v58  ;;  %v1031_v8 = vmul.f32 1.442695, %v1006_v63  ;;  %v1033_v9 = vmul.f32 1.442695, %v1007_v62  ;;  %v1035_v11 = vmul.f32 1.442695, %v1008_v1 }
 0x399   : > { %1789 = vpow2.f32 %v1021_v61  ;;  %v1037_v12 = vmul.f32 1.442695, %v1009_v4  ;;  %v1041_v15 = vmul.f32 1.442695, %v1011_v5  ;;  %v1043_v17 = vmul.f32 1.442695, %v1012_v6 }
 0x39a   : > { %1791 = vpow2.f32 %v1023_v0  ;;  %v1951_v60 = vmov (!%p1496_p6), 0   ;;  %v1815_v63 = vld [vmem:[%s2433_s25] sm:$0xff] (!%p1496_p6)   ;;  %v1814_v62 = vld [vmem:[%s2401_s6 + $0x8] sm:$0xff] (!%p1496_p6)   ;;  %v1283_v0 = vld [vmem:[%s2434_s30 + $0x10] sm:$0xff] (!%p1496_p6) }
 0x39b   : > { %1793 = vpow2.f32 %v1025_v3  ;;  %1812 = vset.pattern.permute.xlu1 (!%p1496_p6), %v1951_v60  ;;  %1811 = vset.pattern.permute.xlu0 (!%p1496_p6), %v1951_v60  ;;  %v1281_v1 = vld [vmem:[%s2435_s7] sm:$0xff] (!%p1496_p6)  ;;  %v1284_v3 = vld [vmem:[%s2435_s7 + $0x18] sm:$0xff] (!%p1496_p6)  ;;  %v1282_v4 = vld [vmem:[%s2435_s7 + $0x8] sm:$0xff] (!%p1496_p6) }
 0x39c   : > { %v1778_v10 = vpop.eup %1777  ;;  %1795 = vpow2.f32 %v1027_v2  ;;  %1297 = vperm.xlu1 (!%p1496_p6), %1812, %v1283_v0   ;;  %1287 = vperm.xlu0 (!%p1496_p6), %1811, %v1281_v1  }
 0x39d   : > { %1797 = vpow2.f32 %v1029_v7  ;;  %v1061_v13 = vrot.slane %v1778_v10, %v2274_v38 }
 0x39e   : > { %v1780_v14 = vpop.eup %1779  ;;  %1799 = vpow2.f32 %v1031_v8 }
 0x39f   : > { %v1782_v16 = vpop.eup %1781  ;;  %1801 = vpow2.f32 %v1033_v9  ;;  %v1065_v44 = vmul.f32 %v1061_v13, %v1055_v41  ;;  %v1063_v49 = vmul.f32 %v1061_v13, %v1053_v42  ;;  %v1066_v53 = vmul.f32 %v1061_v13, %v1056_v43 }
 0x3a0   : > { %v1784_v18 = vpop.eup %1783  ;;  %1803 = vpow2.f32 %v1035_v11  ;;  %v1064_v56 = vmul.f32 %v1061_v13, %v1054_v45  ;;  %1302 = vperm.xlu1 (!%p1496_p6), %1812, %v1284_v3   ;;  %1292 = vperm.xlu0 (!%p1496_p6), %1811, %v1282_v4   ;;  %v1816_v11 = vld [vmem:[%s2433_s25 + $0x8] sm:$0xff] (!%p1496_p6)  }
 0x3a1   : > { %v1786_v19 = vpop.eup %1785  ;;  %v1045_v20 = vpack.c.bf16 %v1784_v18, %v1782_v16  ;;  %1805 = vpow2.f32 %v1037_v12 }
 0x3a2   : > { %v1788_v21 = vpop.eup %1787  ;;  %1807 = vpow2.f32 %v1041_v15 }
 0x3a3   : > { %v1790_v22 = vpop.eup %1789  ;;  %1612 = vmatprep.subr.bf16.mxu0 %v1045_v20  ;;  %v1046_v23 = vpack.c.bf16 %v1788_v21, %v1786_v19  ;;  %1809 = vpow2.f32 %v1043_v17 }
 0x3a4   : > { %v1792_v24 = vpop.eup %1791  ;;  %1613 = vmatpush3.bf16.msra.mxu0 %v1045_v20 }
 0x3a5   : > { %v1794_v25 = vpop.eup %1793  ;;  %1614 = vmatprep.subr.bf16.mxu0 %v1046_v23  ;;  %v1047_v26 = vpack.c.bf16 %v1792_v24, %v1790_v22 }
 0x3a6   : > { %v1796_v27 = vpop.eup %1795 }
 0x3a7   : > { %v1798_v28 = vpop.eup %1797  ;;  %v1048_v29 = vpack.c.bf16 %v1796_v27, %v1794_v25 }
 0x3a8   : > { %v1800_v30 = vpop.eup %1799  ;;  %1615 = vmatpush3.bf16.msra.mxu0 %v1046_v23 }
 0x3a9   : > { %v1802_v31 = vpop.eup %1801  ;;  %1616 = vmatprep.subr.bf16.mxu0 %v1047_v26  ;;  %v1049_v32 = vpack.c.bf16 %v1800_v30, %v1798_v28 }
 0x3aa   : > { %v1804_v33 = vpop.eup %1803 }
 0x3ab   : > { %v1806_v34 = vpop.eup %1805  ;;  %v1050_v35 = vpack.c.bf16 %v1804_v33, %v1802_v31 }
 0x3ac   : > { %v1808_v36 = vpop.eup %1807  ;;  %1617 = vmatpush3.bf16.msra.mxu0 %v1047_v26  ;;  %v1051_v37 = vpack.c.bf16 %v1780_v14, %v1806_v34 }
 0x3ad   : > { %v1810_v39 = vpop.eup %1809  ;;  %1618 = vmatprep.subr.bf16.mxu0 %v1048_v29 }
 0x3ae   : > { %v1052_v40 = vpack.c.bf16 %v1810_v39, %v1808_v36 }
 0x3b0   : > { %1619 = vmatpush3.bf16.msra.mxu0 %v1048_v29 }
 0x3b1   : > { %1620 = vmatprep.subr.bf16.mxu0 %v1049_v32 }
 0x3b4   : > { %1621 = vmatpush3.bf16.msra.mxu0 %v1049_v32 }
 0x3b5   : > { %1622 = vmatprep.subr.bf16.mxu0 %v1050_v35 }
 0x3b8   : > { %1623 = vmatpush3.bf16.msra.mxu0 %v1050_v35 }
 0x3b9   : > { %1624 = vmatprep.subr.bf16.mxu0 %v1051_v37 }
 0x3bc   : > { %1625 = vmatpush3.bf16.msra.mxu0 %v1051_v37 }
 0x3bd   : > { %1626 = vmatprep.subr.bf16.mxu0 %v1052_v40 }
 0x3c0   : > { %1627 = vmatpush3.bf16.msra.mxu0 %v1052_v40 }
 0x3c3   : > { %1629 = vmatmul.mubr.bf16.vlgmr.msra.gmra.mrb[8].mxu0 %v825_v52  ;;  %v1813_v52 = vld [vmem:[%s2401_s6] sm:$0xff] (!%p1496_p6)  }
 0x3c4   : > { %1636 = vmatprep.mubr.msk.bf16.mxu1 (!%p1496_p6), %vm740_vm1, %v1813_v52  ;;  %1642 = vmatprep.mubr.msk.bf16.mxu0 (!%p1496_p6), %vm1225_vm2, %v1815_v63 }
 0x3c5   : > { %1637 = vmatmul.mubr.msk.bf16.vlgmr.msra.gmra.mrb[0].mxu1 (!%p1496_p6), %vm740_vm1, %v1814_v62 }
 0x41b   : > { %v1298_v16 = vpop.permute.xlu1 (!%p1496_p6), %1297  ;;  %v1288_v17 = vpop.permute.xlu0 (!%p1496_p6), %1287 }
 0x41f   : > { %v1303_v25 = vpop.permute.xlu1 (!%p1496_p6), %1302  ;;  %v1293_v28 = vpop.permute.xlu0 (!%p1496_p6), %1292 }
 0x496   : > { %v1630_v46 = vpop.f32.mrb[8].mxu0  ;;  %1128 = sbr.rel (%p1496_p6) target bundleno = 1430 (0x596), region = 140 }
 0x497   : > { %v1118_v50 = vadd.f32 %v1630_v46, %v1065_v44  ;;  %v1101_v51 = vpop.f32.mrb[9].mxu0 }
 0x498   : > { %v1116_v54 = vadd.f32 %v1101_v51, %v1063_v49  ;;  %v1631_v55 = vpop.f32.mrb[10].mxu0  ;;  %v1638_v12 = vpop.f32.mrb[0].mxu1 (!%p1496_p6) }
 0x499   : > { %1122 = vst [vmem:[#allocation5 + $0x10] sm:$0xff] %v1118_v50  ;;  %v1119_v57 = vadd.f32 %v1631_v55, %v1066_v53  ;;  %v1104_v58 = vpop.f32.mrb[11].mxu0  ;;  %v1200_v13 = vpop.f32.mrb[1].mxu1 (!%p1496_p6) }
 0x49a   : > { %1120 = vst [vmem:[#allocation5] sm:$0xff] %v1116_v54  ;;  %v1117_v59 = vadd.f32 %v1104_v58, %v1064_v56  ;;  %v1639_v14 = vpop.f32.mrb[2].mxu1 (!%p1496_p6) }
 0x49b   : > { %1123 = vst [vmem:[#allocation5 + $0x18] sm:$0xff] %v1119_v57  ;;  %v1203_v15 = vpop.f32.mrb[3].mxu1 (!%p1496_p6) }
 0x49c   : > { %1121 = vst [vmem:[#allocation5 + $0x8] sm:$0xff] %v1117_v59 }
 0x4a0   : > { %v1131_v61 = vld [vmem:[#allocation5 + $0x10] sm:$0xff] }
 0x4a1   : > { %1817 = vrcp.f32 %v1131_v61  ;;  %v1129_v5 = vld [vmem:[#allocation5] sm:$0xff] }
 0x4a3   : > { %v1130_v6 = vld [vmem:[#allocation5 + $0x8] sm:$0xff] }
 0x4ab   : > { %v1818_v2 = vpop.eup %1817 }
 0x4ac   : > { %v1136_v7 = vrot.slane %v1818_v2, %v2274_v38 }
 0x4ae   : > { %v1137_v8 = vmul.f32 %v1136_v7, %v1129_v5  ;;  %v1138_v9 = vmul.f32 %v1136_v7, %v1130_v6 }
 0x4b0   : > { %v1139_v10 = vpack.c.bf16 %v1138_v9, %v1137_v8 }
 0x4b2   : > { %1640 = vmatprep.subr.bf16.mxu0 %v1139_v10 }
 0x4b3   : > { %1641 = vmatpush3.bf16.msra.mxu0 %v1139_v10 }
 0x4b6   : > { %1643 = vmatmul.mubr.msk.bf16.vlgmr.msra.gmra.mrb[0].mxu0 %vm1225_vm2, %v1816_v11 }
 0x589   : > { %v1644_v18 = vpop.f32.mrb[0].mxu0 }
 0x58a   : > { %v1275_v19 = vadd.f32 %v1644_v18, %v1638_v12  ;;  %v1266_v38 = vpop.f32.mrb[1].mxu0 }
 0x58b   : > { %v1267_v20 = vadd.f32 %v1266_v38, %v1200_v13  ;;  %v1645_v21 = vpop.f32.mrb[2].mxu0 }
 0x58c   : > { %v1307_v22 = vadd.f32 %v1298_v16, %v1275_v19  ;;  %v1278_v23 = vadd.f32 %v1645_v21, %v1639_v14  ;;  %v1269_v24 = vpop.f32.mrb[3].mxu0 }
 0x58d   : > { %v1305_v26 = vadd.f32 %v1288_v17, %v1267_v20  ;;  %v1270_v27 = vadd.f32 %v1269_v24, %v1203_v15 }
 0x58e   : > { %v1308_v29 = vadd.f32 %v1303_v25, %v1278_v23  ;;  %v1311_v31 = vmax.f32 %v1307_v22, 0.0 }
 0x58f   : > { %v1306_v30 = vadd.f32 %v1293_v28, %v1270_v27  ;;  %v1309_v33 = vmax.f32 %v1305_v26, 0.0 }
 0x590   : > { %v1312_v32 = vmax.f32 %v1308_v29, 0.0 }
 0x591   : > { %v1310_v34 = vmax.f32 %v1306_v30, 0.0 }
 0x592   : > { %v1526_v35 = vpack.c.bf16 %v1312_v32, %v1311_v31 }
 0x593   : > { %v1521_v36 = vpack.c.bf16 %v1310_v34, %v1309_v33 }
 0x594   : > { %1528 = vst [vmem:[%s2149_s29 + $0x8] sm:$0xff] %v1526_v35  }
 0x595   : > { %1522 = vst [vmem:[%s2149_s29] sm:$0xff] %v1521_v36  }
 0x596 PF: > { %s2436_s8 = sld [smem:[#allocation13_spill]]  ;;  %s2437_s30 = sld [smem:[#allocation12_spill]] }
 0x597   : > { %s1348_s15 = sshll.u32 %s2149_s29, 4  ;;  %s2438_s10 = sld [smem:[#allocation23_spill]]  ;;  %s2324_s15 = int_to_ptr.vmem [resolvable:$true] %s1348_s15 }
 0x598   : > { %s1334_s1 = scalar_lea.sflag [#allocation9], %s2142_s9  ;;  %s1819_s2 = scalar_lea.vmem %s2324_s15, 256 }
 0x599   : > { %p1820_p7 = scmp.ne.s32.totalorder %s2324_s15, %s1819_s2 }
 0x59b   : > { %p1821_p8 = pnand %p1820_p7, %p2105_p11 }
 0x59c   : > { %s1510_s26 = sshll.u32 %s2436_s8, 3  ;;  %s1952_s8 = smov [#allocation8]  }
 0x59d   : > { %s1345_s16 = sadd.s32 %s2437_s30, %s1510_s26  ;;  %s2439_s24 = smov %s2438_s10 }
 0x59e   : > { %s1511_s28 = sshll.u32 %s1345_s16, 6  ;;  %p1822_p9 = pneg %p1821_p8 }
 0x59f   : > { %s2329_s0 = scalar_lea.hbm %s2438_s10, %s1511_s28  ;;  %s1823_s30 = sshll.u32 %s1952_s8, 4  ;;  %s1824_s30 = int_to_ptr.vmem [resolvable:$false] %s1823_s30 }
 0x5a0   : > { %s1825_s29 = scalar_lea.vmem %s1824_s30, 512  ;;  %p1826_p10 = scmp.lt.s32.totalorder %s2324_s15, %s1824_s30 }
 0x5a1   : > { %p1827_p13 = scmp.lt.s32.totalorder %s1825_s29, %s1819_s2 }
 0x5a3   : > { %p1828_p0 = por %p1827_p13, %p1826_p10 }
 0x5a5   : > { %p1829_p2 = pnand %p1828_p0, %p1822_p9 }
 0x5a7   : > { %1832 = shalt.err (!%p1829_p2)
}
 0x5a8   : > { %s1833_s26 = scalar_lea.hbm %s2329_s0, 256  ;;  %s1837_s14 = scalar_lea.hbm %s2439_s24, 1024 }
 0x5a9   : > { %p1834_p1 = scmp.ne.s32.totalorder %s2329_s0, %s1833_s26  ;;  %p1838_p5 = scmp.lt.u32.totalorder %s2329_s0, %s2439_s24 }
 0x5aa   : > { %p1839_p6 = scmp.lt.u32.totalorder %s1837_s14, %s1833_s26  ;;  %p1841_p8 = scmp.lt.u32.totalorder %s1833_s26, %s2329_s0 }
 0x5ab   : > { %p1835_p3 = pnand %p1834_p1, %p2105_p11 }
 0x5ac   : > { %p1840_p7 = por %p1839_p6, %p1838_p5 }
 0x5ad   : > { %p1836_p4 = pneg %p1835_p3 }
 0x5ae   : > { %p1842_p9 = por %p1841_p8, %p1840_p7 }
 0x5b0   : > { %p1843_p10 = pnand %p1842_p9, %p1836_p4 }
 0x5b2   : > { %1846 = shalt.err (!%p1843_p10)
}
 0x5b3   : > { %s1953_s2 = smov 64   ;;  %s1954_s8 = smov 128  }
 0x5b4   : > { %s1955_s30 = smov 4  }
 0x5b5   : > { %1654 = dma.vmem_to_hbm [thread:$0]  (%p2105_p11), %s2324_s15, 256, %s2329_s0, %s1334_s1, %s1953_s2, %s1954_s8, %s1955_s30  }
 0x5b6 PF: > { %s2440_s29 = sld [smem:[#allocation11_spill]]  ;;  %p1660_p13 = scmp.ge.s32.totalorder %s1945_s20, 2 }
 0x5b8   : > { %p1657_p0 = pnand %p1660_p13, %p2109_p12 }
 0x5bc   : > { %s1363_s28 = sand.u32 1, %s2440_s29  }
 0x5bd   : > { %s1364_s26 = scalar_lea.sflag [#allocation9], %s1363_s28 }
 0x5be   : > { %1896 = dma.done.wait (!%p1657_p0), %s1364_s26, 256  }
 0x5bf   : > { %1898 = vsyncadd (!%p1657_p0), %s1364_s26, 4294967040  ;;  %s22_s20 = sadd.s32 1, %s1945_s20   ;;  %s2442_s0 = sld [smem:[#allocation14_spill]] }
 0x5c0   : > { %p19_p2 = scmp.ge.s32.totalorder %s22_s20, 10   ;;  %s2443_s1 = sld [smem:[#allocation15_spill]] }
 0x5c1   : > { %s2444_s23 = sld [smem:[#allocation16_spill]]  ;;  %s2445_s30 = smov %s1913_s12 }
 0x5c2   : > { %s2446_s10 = smov %s1909_s11  ;;  %s2447_s11 = smov %s2120_s22 }
 0x5c3   : > { %s2448_s12 = smov %s1917_s13  ;;  %s2449_s13 = smov %s2117_s21 }
 0x5c4   : > { %s2450_s14 = smov %s1933_s17  ;;  %s2451_s15 = smov %s1937_s18 }
 0x5c5   : > { %s2452_s16 = smov %s1941_s19  ;;  %s2453_s17 = smov %s2442_s0 }
 0x5c6   : > { %s2454_s18 = smov %s2443_s1  ;;  %21 = sbr.rel (!%p19_p2) target bundleno = 14 (0xe), region = 188 }
 0x5c7   : > { %s2455_s19 = smov %s2444_s23 }
 0x5cd   :  { %1369 = vsyncpa [#allocation9], 1 }
 0x5ce   :  { %1371 = vsyncpa [#allocation9 + $0x1], 1 }

</bundles_post_ra>
